<compile_context>
chip_gen: v6e
topology: v6e:2x2x1
jax: 0.10.0
libtpu: 0.0.40
codegen_flags: <defaults>
</compile_context>

<pallas_src>
import functools

import jax
import jax.numpy as jnp
from jax.experimental import pallas as pl
from jax.experimental.pallas import tpu as pltpu


def _make_fused_mlp_kernel(num_hidden):
    """Build a fused-MLP kernel body for `num_hidden` hidden layers.

    Ref order: x, (w, b, mask) * num_hidden, w_last, b_last, out
    """

    def kernel(*refs):
        x_ref = refs[0]
        o_ref = refs[-1]

        act = x_ref[...]
        idx = 1
        for _ in range(num_hidden):
            w_ref, b_ref, m_ref = refs[idx], refs[idx + 1], refs[idx + 2]
            idx += 3
            # y = relu(x @ W + b) then dropout via pre-scaled keep mask
            # (mask entries are 2.0 where kept, 0.0 where dropped).
            act = jnp.dot(act, w_ref[...], preferred_element_type=jnp.float32)
            act = jnp.maximum(act + b_ref[...], 0.0)
            act = act * m_ref[...]

        w_ref, b_ref = refs[idx], refs[idx + 1]
        y = jnp.dot(act, w_ref[...], preferred_element_type=jnp.float32)
        o_ref[...] = (y + b_ref[...]).astype(o_ref.dtype)

    return kernel


def _fused_mlp_pallas(x, params, masks):
    """Single pallas_call for the whole MLP. Everything resident in VMEM."""
    B = x.shape[0]
    num_hidden = len(params) - 1
    fout_last = params[-1][0].shape[1]

    inputs = [x]
    for (w, b), m in zip(params[:-1], masks):
        inputs.extend([w, b.reshape(1, -1), m])
    w_last, b_last = params[-1]
    inputs.extend([w_last, b_last.reshape(1, -1)])

    vmem = pl.BlockSpec(memory_space=pltpu.MemorySpace.VMEM)
    return pl.pallas_call(
        _make_fused_mlp_kernel(num_hidden),
        out_shape=jax.ShapeDtypeStruct((B, fout_last), jnp.float32),
        in_specs=[vmem] * len(inputs),
        out_specs=vmem,
    )(*inputs)


@jax.jit
def mlp_forward(x, params, key):
    """Jitted forward: generate dropout keep-masks, then one fused kernel."""
    num_hidden = len(params) - 1
    masks = []
    if num_hidden > 0:
        keys = jax.random.split(key, num_hidden)
        for l in range(num_hidden):
            fout = params[l][0].shape[1]
            keep = jax.random.bernoulli(keys[l], 0.5, (x.shape[0], fout))
            # Inverted dropout: scale kept units by 1/(1-p) = 2.0.
            masks.append(keep.astype(jnp.float32) * 2.0)
    return _fused_mlp_pallas(x, params, masks)


class ClassificationNetPallas:
    """Pallas equivalent of ClassificationNet(Layers)."""

    def __init__(self, layers, key):
        self.params = []
        for fin, fout in zip(layers, layers[1:]):
            key, kw, kb = jax.random.split(key, 3)
            # PyTorch-like uniform(-1/sqrt(fin), 1/sqrt(fin)) init.
            bound = 1.0 / float(fin) ** 0.5
            w = jax.random.uniform(kw, (fin, fout), jnp.float32, -bound, bound)
            b = jax.random.uniform(kb, (fout,), jnp.float32, -bound, bound)
            self.params.append((w, b))

    def __call__(self, x, dropout_key):
        return mlp_forward(x, self.params, dropout_key)


if __name__ == "__main__":
    key = jax.random.PRNGKey(0)
    k_in, k_net, k_drop = jax.random.split(key, 3)

    # Small MLP: Layers = [32, 64, 64, 16], batch = 8
    Layers = [32, 64, 64, 16]
    batch = 8
    x = jax.random.normal(k_in, (batch, Layers[0]), dtype=jnp.float32)

    net = ClassificationNetPallas(Layers, k_net)
    out = net(x, k_drop)
    out = jax.block_until_ready(out)

    assert out.shape == (batch, Layers[-1]), out.shape
    assert out.dtype == jnp.float32
    assert bool(jnp.all(jnp.isfinite(out)))
    print("KERNEL_OK")
</pallas_src>

<mosaic_0001>
module attributes {stable_mosaic.version = 11 : i64} {
  func.func @kernel(%arg0: memref<8x32xf32, #tpu.memory_space<vmem>>, %arg1: memref<32x64xf32, #tpu.memory_space<vmem>>, %arg2: memref<1x64xf32, #tpu.memory_space<vmem>>, %arg3: memref<8x64xf32, #tpu.memory_space<vmem>>, %arg4: memref<64x64xf32, #tpu.memory_space<vmem>>, %arg5: memref<1x64xf32, #tpu.memory_space<vmem>>, %arg6: memref<8x64xf32, #tpu.memory_space<vmem>>, %arg7: memref<64x16xf32, #tpu.memory_space<vmem>>, %arg8: memref<1x16xf32, #tpu.memory_space<vmem>>, %arg9: memref<8x16xf32, #tpu.memory_space<vmem>>) attributes {dimension_semantics = [], scalar_prefetch = 0 : i64, scratch_operands = 0 : i64, tpu.core_type = #tpu.core_type<tc>} {
    %c0 = arith.constant 0 : index
    %c0_0 = arith.constant 0 : index
    %0 = vector.load %arg0[%c0, %c0_0] : memref<8x32xf32, #tpu.memory_space<vmem>>, vector<8x32xf32>
    %c0_1 = arith.constant 0 : index
    %c0_2 = arith.constant 0 : index
    %1 = vector.load %arg1[%c0_1, %c0_2] : memref<32x64xf32, #tpu.memory_space<vmem>>, vector<32x64xf32>
    %cst = arith.constant dense<0.000000e+00> : vector<8x64xf32>
    %2 = tpu.matmul %0, %1, %cst {dimension_numbers = #tpu.dot_dimension_numbers<[1], [0], [0], [1], [0, 0, 1, 1], [], []>} : vector<8x32xf32>, vector<32x64xf32>, vector<8x64xf32> -> vector<8x64xf32>
    %c0_3 = arith.constant 0 : index
    %c0_4 = arith.constant 0 : index
    %3 = vector.load %arg2[%c0_3, %c0_4] : memref<1x64xf32, #tpu.memory_space<vmem>>, vector<1x64xf32>
    %4 = vector.broadcast %3 : vector<1x64xf32> to vector<8x64xf32>
    %5 = arith.addf %2, %4 : vector<8x64xf32>
    %cst_5 = arith.constant 0.000000e+00 : f32
    %6 = vector.broadcast %cst_5 : f32 to vector<8x64xf32>
    %7 = arith.maximumf %5, %6 : vector<8x64xf32>
    %c0_6 = arith.constant 0 : index
    %c0_7 = arith.constant 0 : index
    %8 = vector.load %arg3[%c0_6, %c0_7] : memref<8x64xf32, #tpu.memory_space<vmem>>, vector<8x64xf32>
    %9 = arith.mulf %7, %8 : vector<8x64xf32>
    %c0_8 = arith.constant 0 : index
    %c0_9 = arith.constant 0 : index
    %10 = vector.load %arg4[%c0_8, %c0_9] : memref<64x64xf32, #tpu.memory_space<vmem>>, vector<64x64xf32>
    %cst_10 = arith.constant dense<0.000000e+00> : vector<8x64xf32>
    %11 = tpu.matmul %9, %10, %cst_10 {dimension_numbers = #tpu.dot_dimension_numbers<[1], [0], [0], [1], [0, 0, 1, 1], [], []>} : vector<8x64xf32>, vector<64x64xf32>, vector<8x64xf32> -> vector<8x64xf32>
    %c0_11 = arith.constant 0 : index
    %c0_12 = arith.constant 0 : index
    %12 = vector.load %arg5[%c0_11, %c0_12] : memref<1x64xf32, #tpu.memory_space<vmem>>, vector<1x64xf32>
    %13 = vector.broadcast %12 : vector<1x64xf32> to vector<8x64xf32>
    %14 = arith.addf %11, %13 : vector<8x64xf32>
    %cst_13 = arith.constant 0.000000e+00 : f32
    %15 = vector.broadcast %cst_13 : f32 to vector<8x64xf32>
    %16 = arith.maximumf %14, %15 : vector<8x64xf32>
    %c0_14 = arith.constant 0 : index
    %c0_15 = arith.constant 0 : index
    %17 = vector.load %arg6[%c0_14, %c0_15] : memref<8x64xf32, #tpu.memory_space<vmem>>, vector<8x64xf32>
    %18 = arith.mulf %16, %17 : vector<8x64xf32>
    %c0_16 = arith.constant 0 : index
    %c0_17 = arith.constant 0 : index
    %19 = vector.load %arg7[%c0_16, %c0_17] : memref<64x16xf32, #tpu.memory_space<vmem>>, vector<64x16xf32>
    %cst_18 = arith.constant dense<0.000000e+00> : vector<8x16xf32>
    %20 = tpu.matmul %18, %19, %cst_18 {dimension_numbers = #tpu.dot_dimension_numbers<[1], [0], [0], [1], [0, 0, 1, 1], [], []>} : vector<8x64xf32>, vector<64x16xf32>, vector<8x16xf32> -> vector<8x16xf32>
    %c0_19 = arith.constant 0 : index
    %c0_20 = arith.constant 0 : index
    %21 = vector.load %arg8[%c0_19, %c0_20] : memref<1x16xf32, #tpu.memory_space<vmem>>, vector<1x16xf32>
    %22 = vector.broadcast %21 : vector<1x16xf32> to vector<8x16xf32>
    %23 = arith.addf %20, %22 : vector<8x16xf32>
    %c0_21 = arith.constant 0 : index
    %c0_22 = arith.constant 0 : index
    %24 = vector.load %arg9[%c0_21, %c0_22] : memref<8x16xf32, #tpu.memory_space<vmem>>, vector<8x16xf32>
    tpu.vector_store %arg9[%c0_21, %c0_22], %23 {strides = array<i32>} : memref<8x16xf32, #tpu.memory_space<vmem>>, vector<8x16xf32>,
    return
  }
}

</mosaic_0001>

<bundles_post_ra>
// kernel: mlp_forward.3
= control target key start
LH: loop header
LB: loop body
LE: loop exit
PB: predicated region body
PF: predicated region fallthrough
CT: control target
= control target key end

     0   :  { %v421_v1 = vmov 0.0   ;;  %vm422_vm0 = vmmov 0   ;;  %s583_s0 = inlined_call_operand.vmem [shape: f32[8,32], index: 0, kind: input, shape index: {}]   ;;  %s584_s1 = inlined_call_operand.vmem [shape: f32[32,64], index: 1, kind: input, shape index: {}]   ;;  %s585_s2 = inlined_call_operand.vmem [shape: f32[1,64], index: 2, kind: input, shape index: {}]   ;;  %s586_s3 = inlined_call_operand.vmem [shape: f32[8,64], index: 3, kind: input, shape index: {}]   ;;  %s587_s4 = inlined_call_operand.vmem [shape: f32[64,64], index: 4, kind: input, shape index: {}]   ;;  %s588_s5 = inlined_call_operand.vmem [shape: f32[1,64], index: 5, kind: input, shape index: {}]   ;;  %s589_s6 = inlined_call_operand.vmem [shape: f32[8,64], index: 6, kind: input, shape index: {}]   ;;  %s590_s7 = inlined_call_operand.vmem [shape: f32[64,16], index: 7, kind: input, shape index: {}]   ;;  %s591_s8 = inlined_call_operand.vmem [shape: f32[1,16], index: 8, kind: input, shape index: {}]   ;;  %s592_s9 = inlined_call_operand.hbm [shape: f32[8,16], index: 9, kind: output, shape index: {}]  }
   0x1   :  { %v37_v0 = vld [vmem:[%s584_s1 + $0x18] sm:$0xff]  ;;  %347 = vmatprep.subr.mxu0 %v421_v1  ;;  %v36_v2 = vld [vmem:[%s584_s1 + $0x10] sm:$0xff]  ;;  %355 = vmatprep.mubr.msk.f32.mxu0 %vm422_vm0, %v421_v1  ;;  %v35_v5 = vld [vmem:[%s584_s1 + $0x8] sm:$0xff] }
   0x2   :  { %v129_v3 = vld [vmem:[%s587_s4 + $0x38] sm:$0xff]  ;;  %348 = vmatpush3.msra.mxu0 %v37_v0  ;;  %358 = vmatprep.subr.mxu1 %v421_v1  ;;  %v128_v4 = vld [vmem:[%s587_s4 + $0x30] sm:$0xff] }
   0x3   :  { %349 = vmatprep.subr.mxu0 %v421_v1  ;;  %359 = vmatpush3.msra.mxu1 %v129_v3 }
   0x4   :  { %14 = vsyncpa [#allocation3], 0  ;;  %350 = vmatpush3.msra.mxu0 %v36_v2  ;;  %360 = vmatprep.subr.mxu1 %v421_v1  ;;  %v127_v6 = vld [vmem:[%s587_s4 + $0x28] sm:$0xff]  ;;  %v34_v7 = vld [vmem:[%s584_s1] sm:$0xff]  ;;  %vm45_vm1 = vcmask 261120   ;;  %vm137_vm2 = vcmask 523264  }
   0x5   :  { %351 = vmatprep.subr.mxu0 %v421_v1  ;;  %361 = vmatpush3.msra.mxu1 %v128_v4  ;;  %v33_v8 = vld [vmem:[%s583_s0] sm:$0xff]  ;;  %v125_v10 = vld [vmem:[%s587_s4 + $0x18] sm:$0xff]  ;;  %v124_v11 = vld [vmem:[%s587_s4 + $0x10] sm:$0xff]  ;;  %vm302_vm3 = vcmask 130048  }
   0x6   :  { %352 = vmatpush3.msra.mxu0 %v35_v5  ;;  %362 = vmatprep.subr.mxu1 %v421_v1  ;;  %v126_v9 = vld [vmem:[%s587_s4 + $0x20] sm:$0xff]  ;;  %v123_v12 = vld [vmem:[%s587_s4 + $0x8] sm:$0xff]  ;;  %v221_v14 = vld [vmem:[%s590_s7 + $0x38] sm:$0xff] }
   0x7   :  { %353 = vmatprep.subr.mxu0 %v421_v1  ;;  %363 = vmatpush3.msra.mxu1 %v127_v6  ;;  %v122_v13 = vld [vmem:[%s587_s4] sm:$0xff]  ;;  %v220_v15 = vld [vmem:[%s590_s7 + $0x30] sm:$0xff]  ;;  %v219_v16 = vld [vmem:[%s590_s7 + $0x28] sm:$0xff] }
   0x8   :  { %354 = vmatpush3.msra.mxu0 %v34_v7  ;;  %364 = vmatprep.subr.mxu1 %v421_v1  ;;  %v218_v17 = vld [vmem:[%s590_s7 + $0x20] sm:$0xff]  ;;  %v217_v25 = vld [vmem:[%s590_s7 + $0x18] sm:$0xff]  ;;  %v216_v26 = vld [vmem:[%s590_s7 + $0x10] sm:$0xff] }
   0x9   :  { %356 = vmatmul.mubr.msk.f32.vlgmr.msra.gmra.mxu0 %vm45_vm1, %v33_v8  ;;  %365 = vmatpush3.msra.mxu1 %v126_v9  ;;  %v318_v18 = vld [vmem:[%s585_s2] ss:$0 sm:$0xff]  ;;  %v215_v27 = vld [vmem:[%s590_s7 + $0x8] sm:$0xff] }
   0xa   :  { %366 = vmatprep.subr.mxu1 %v421_v1  ;;  %374 = vmatprep.mubr.msk.f32.mxu1 %vm422_vm0, %v421_v1  ;;  %v120_v21 = vld [vmem:[%s586_s3] sm:$0xff] }
   0xb   :  { %377 = vmatprep.subr.mxu0 %v421_v1  ;;  %393 = vmatprep.mubr.msk.f32.mxu0 %vm422_vm0, %v421_v1  ;;  %v214_v28 = vld [vmem:[%s590_s7] sm:$0xff]  ;;  %s423_s7 = smov [#allocation2]  }
   0xc   :  { %367 = vmatpush3.msra.mxu1 %v125_v10  ;;  %378 = vmatpush3.msra.mxu0 %v221_v14  ;;  %v320_v29 = vld [vmem:[%s588_s5] ss:$0 sm:$0xff]  ;;  %s310_s12 = sshll.u32 %s423_s7, 4  ;;  %s311_s12 = int_to_ptr.vmem [resolvable:$true] %s310_s12 }
   0xd   :  { %368 = vmatprep.subr.mxu1 %v421_v1  ;;  %379 = vmatprep.subr.mxu0 %v421_v1  ;;  %v212_v32 = vld [vmem:[%s589_s6] sm:$0xff]  ;;  %s399_s5 = scalar_lea.vmem %s311_s12, 128  ;;  %p404_p1 = scmp.lt.s32.totalorder %s311_s12, %s311_s12 }
   0xe   :  { %369 = vmatpush3.msra.mxu1 %v124_v11  ;;  %380 = vmatpush3.msra.mxu0 %v220_v15  ;;  %v322_v36 = vld [vmem:[%s591_s8] ss:$0 sm:$0xff]  ;;  %p400_p0 = scmp.ne.s32.totalorder %s311_s12, %s399_s5  ;;  %p405_p2 = scmp.lt.s32.totalorder %s399_s5, %s399_s5 }
   0xf   :  { %370 = vmatprep.subr.mxu1 %v421_v1  ;;  %381 = vmatprep.subr.mxu0 %v421_v1 }
  0x10   :  { %371 = vmatpush3.msra.mxu1 %v123_v12  ;;  %382 = vmatpush3.msra.mxu0 %v219_v16  ;;  %p406_p3 = por %p405_p2, %p404_p1 }
  0x11   :  { %372 = vmatprep.subr.mxu1 %v421_v1  ;;  %383 = vmatprep.subr.mxu0 %v421_v1 }
  0x12   :  { %373 = vmatpush3.msra.mxu1 %v122_v13  ;;  %384 = vmatpush3.msra.mxu0 %v218_v17  ;;  %p407_p4 = pnand %p406_p3, %p400_p0 }
  0x13   :  { %385 = vmatprep.subr.mxu0 %v421_v1 }
  0x14   :  { %386 = vmatpush3.msra.mxu0 %v217_v25 }
  0x15   :  { %387 = vmatprep.subr.mxu0 %v421_v1 }
  0x16   :  { %388 = vmatpush3.msra.mxu0 %v216_v26 }
  0x17   :  { %389 = vmatprep.subr.mxu0 %v421_v1 }
  0x18   :  { %390 = vmatpush3.msra.mxu0 %v215_v27 }
  0x19   :  { %391 = vmatprep.subr.mxu0 %v421_v1 }
  0x1a   :  { %392 = vmatpush3.msra.mxu0 %v214_v28 }
  0xc9   :  { %v115_v19 = vpop.f32.mrf.mxu0 }
  0xca   :  { %v116_v20 = vadd.f32 %v318_v18, %v115_v19 }
  0xcb   :  { %v357_v22 = vpop.f32.mrf.mxu0 }
  0xcc   :  { %v119_v23 = vmax.f32 %v116_v20, 0.0 }
  0xce   :  { %v121_v24 = vmul.f32 %v120_v21, %v119_v23 }
  0xd0   :  { %375 = vmatmul.mubr.msk.f32.vlgmr.msra.gmra.mxu1 %vm137_vm2, %v121_v24 }
 0x190   :  { %v207_v30 = vpop.f32.mrf.mxu1 }
 0x191   :  { %v208_v31 = vadd.f32 %v320_v29, %v207_v30 }
 0x192   :  { %v376_v33 = vpop.f32.mrf.mxu1 }
 0x193   :  { %v211_v34 = vmax.f32 %v208_v31, 0.0 }
 0x195   :  { %v213_v35 = vmul.f32 %v212_v32, %v211_v34 }
 0x197   :  { %394 = vmatmul.mubr.msk.f32.vlgmr.msra.gmra.mxu0 %vm137_vm2, %v213_v35 }
 0x257   :  { %v298_v37 = vpop.f32.mrf.mxu0 }
 0x258   :  { %v299_v38 = vadd.f32 %v322_v36, %v298_v37 }
 0x259   :  { %v395_v39 = vpop.f32.mrf.mxu0 }
 0x25a   :  { %303 = vst.msk [vmem:[#allocation2] sm:$0xff] %vm302_vm3, %v299_v38 }
 0x25b   :  { %410 = shalt.err (!%p407_p4)
}
 0x25c   :  { %313 = dma.vmem_to_hbm [thread:$0]  %s311_s12, 128, %s592_s9, [#allocation3]  }
 0x25d   :  { %419 = dma.done.wait [#allocation3], 128  }
 0x25e   :  { %420 = vsyncadd [#allocation3], 4294967168 }
 0x25f   :  { %317 = vsyncpa [#allocation3], 1 }

</bundles_post_ra>
